<compile_context>
chip_gen: v7x
topology: tpu7x:2x2x1
jax: 0.10.0
libtpu: 0.0.40
codegen_flags: <defaults>
</compile_context>

<pallas_src>
import jax
import jax.numpy as jnp
import numpy as np
from jax.experimental import pallas as pl
from jax.experimental.pallas import tpu as pltpu

NCLS = 11            # LaPa face-parsing classes
CIN = 3              # RGB channels
CLASS_IDX = 10       # channel selected by the reference module (out[:, 10])
R_TARGET = 256       # rows of 128 pixels per grid step (32K px ~ 384 KiB f32 block)


def _ceil_div(a, b):
    return -(-a // b)


def _plan_tiles(hw, r_target=R_TARGET):
    """Dense (rows, 128) pixel layout: rows per tile R (mult of 8), padded rows, #tiles."""
    rows = _ceil_div(hw, 128)
    rows8 = _ceil_div(rows, 8) * 8                 # sublane-aligned row count
    if rows8 <= r_target:
        return rows8, rows8, 1                     # single tile
    n_tiles = _ceil_div(rows8, r_target)
    r = _ceil_div(_ceil_div(rows8, n_tiles), 8) * 8    # <= r_target, multiple of 8
    return r, n_tiles * r, n_tiles


def _parseface_loss_kernel(x_ref, gt_ref, w_ref, b_ref, out_ref):
    # x_ref:  (1, CIN, R, 128)  pixel tile of one image, raw pred in [-1, 1]
    # gt_ref: (R, 128)          ground-truth mask tile (shared across the batch)
    # w_ref:  (NCLS, CIN) f32 in SMEM -- head weights with the 127.5 preprocess folded in
    # b_ref:  (NCLS,)     f32 in SMEM -- head bias    with the 127.5 preprocess folded in
    # out_ref:(1, 1, 8, 128)    dense per-tile partial sum of the BCE terms
    x0 = x_ref[0, 0].astype(jnp.float32)           # (R, 128)
    x1 = x_ref[0, 1].astype(jnp.float32)
    x2 = x_ref[0, 2].astype(jnp.float32)
    y = gt_ref[...]                                # (R, 128)

    # 11 per-class logit planes: scalar(SMEM) * plane FMAs on the VPU (no MXU).
    logits = [b_ref[k] + w_ref[k, 0] * x0 + w_ref[k, 1] * x1 + w_ref[k, 2] * x2
              for k in range(NCLS)]

    # softmax over the class planes; only class CLASS_IDX's probability is needed.
    m = logits[0]
    for k in range(1, NCLS):
        m = jnp.maximum(m, logits[k])
    denom = jnp.exp(logits[0] - m)
    e_sel = denom if CLASS_IDX == 0 else None
    for k in range(1, NCLS):
        ek = jnp.exp(logits[k] - m)
        denom = denom + ek
        if k == CLASS_IDX:
            e_sel = ek
    # exact divide keeps the f32 test tolerance; pl.reciprocal(denom, approx=True)
    # is a further EUP-side option if the consumer tolerates ~1e-3 relative error.
    parsing = e_sel / denom                        # (R, 128), in [0, 1]

    # nn.BCEWithLogitsLoss with `parsing` treated as the logit (reference quirk).
    # parsing >= 0  =>  max(z, 0) == z and |z| == z.
    bce = parsing * (1.0 - y) + jnp.log1p(jnp.exp(-parsing))

    # Fold (R,128) -> dense (8,128) partial sums with plain VALU adds (no wide
    # cross-lane XLU reduce, lane-dense unmasked store); final sum in XLA epilogue.
    out_ref[...] = jnp.sum(bce.reshape(-1, 8, 128), axis=0)[None, None]


def parseface_loss(pred_img, gt, w, b):
    """pred_img: (N, 3, H, W) in [-1, 1] (any float dtype); gt: (1, 1, H, W) in [0, 1].
    w: (3, NCLS) synthetic 1x1-conv parser-head weight; b: (NCLS,) bias."""
    N, C, H, W = pred_img.shape
    assert C == CIN
    HW = H * W
    R, ROWS_P, n_tiles = _plan_tiles(HW)
    HWP = ROWS_P * 128
    n_pad = HWP - HW

    # Free reshape to the dense (rows, 128) pixel layout; keep the producer dtype
    # (a bf16 producer halves HBM reads; the kernel upcasts to f32 internally).
    x = pred_img.reshape(N, C, HW)
    gt_flat = gt.reshape(HW).astype(jnp.float32)
    if n_pad:
        x = jnp.pad(x, ((0, 0), (0, 0), (0, n_pad)))
        gt_flat = jnp.pad(gt_flat, (0, n_pad))
    x = x.reshape(N, C, ROWS_P, 128)
    gt2 = gt_flat.reshape(ROWS_P, 128)             # single mask; never repeated in HBM

    # Fold img = (pred + 1) * 127.5 into the 1x1 head:
    #   logits_k = sum_c (127.5*w[c,k]) * pred_c + (b_k + 127.5*sum_c w[c,k])
    w32 = w.astype(jnp.float32)                    # (C, NCLS)
    b32 = b.astype(jnp.float32)                    # (NCLS,)
    w_eff = (127.5 * w32).T                        # (NCLS, C) -> SMEM scalars
    b_eff = b32 + 127.5 * jnp.sum(w32, axis=0)     # (NCLS,)   -> SMEM scalars

    partial = pl.pallas_call(
        _parseface_loss_kernel,
        out_shape=jax.ShapeDtypeStruct((n_tiles, N, 8, 128), jnp.float32),
        grid_spec=pltpu.PrefetchScalarGridSpec(
            num_scalar_prefetch=0,
            grid=(n_tiles, N),          # batch innermost -> gt tile DMA'd once per tile
            in_specs=[
                pl.BlockSpec((1, CIN, R, 128), lambda t, n: (n, 0, t, 0)),  # image tile
                pl.BlockSpec((R, 128), lambda t, n: (t, 0)),                # gt tile
                pl.BlockSpec(memory_space=pltpu.MemorySpace.SMEM),          # w_eff
                pl.BlockSpec(memory_space=pltpu.MemorySpace.SMEM),          # b_eff
            ],
            out_specs=pl.BlockSpec((1, 1, 8, 128), lambda t, n: (t, n, 0, 0)),
        ),
        compiler_params=pltpu.CompilerParams(
            dimension_semantics=("parallel", "parallel"),
            vmem_limit_bytes=32 * 1024 * 1024),
    )(x, gt2, w_eff, b_eff)

    total = jnp.sum(partial)

    if n_pad:
        # Padded pixels (pred = 0, gt = 0) all contribute the same constant BCE
        # term; subtract it exactly instead of spending kernel bandwidth on a mask.
        mpad = jnp.max(b_eff)
        epad = jnp.exp(b_eff - mpad)
        p_pad = epad[CLASS_IDX] / jnp.sum(epad)
        bce_pad = p_pad + jnp.log1p(jnp.exp(-p_pad))
        total = total - (N * n_pad) * bce_pad

    # mean over N * 1 * H * W elements (matches nn.BCEWithLogitsLoss default)
    return total / (N * HW)


def _reference(pred_img, gt, w, b):
    img = (pred_img.astype(jnp.float32) + 1.0) / 2.0 * 255.0          # N,C,H,W
    logits = jnp.einsum('nchw,ck->nkhw', img, w.astype(jnp.float32))
    logits = logits + b.astype(jnp.float32)[None, :, None, None]
    probs = jax.nn.softmax(logits, axis=1)
    parsing = probs[:, CLASS_IDX]                                     # N,H,W
    y = jnp.broadcast_to(gt[0, 0][None].astype(jnp.float32), parsing.shape)
    z = parsing
    bce = jnp.maximum(z, 0.0) - z * y + jnp.log1p(jnp.exp(-jnp.abs(z)))
    return jnp.mean(bce)


if __name__ == "__main__":
    key = jax.random.PRNGKey(0)
    k1, k2, k3, k4 = jax.random.split(key, 4)

    N, C, H, W = 2, 3, 16, 16
    pred_img = jax.random.uniform(k1, (N, C, H, W), jnp.float32,
                                  minval=-1.0, maxval=1.0)
    gt = jax.random.uniform(k2, (1, 1, H, W), jnp.float32,
                            minval=0.0, maxval=1.0)

    # deterministic synthetic parser-head parameters (3 -> 11 classes)
    w = 0.01 * jax.random.normal(k3, (CIN, NCLS), jnp.float32)
    b = 0.1 * jax.random.normal(k4, (NCLS,), jnp.float32)

    loss = parseface_loss(pred_img, gt, w, b)
    jax.block_until_ready(loss)

    ref = _reference(pred_img, gt, w, b)
    np.testing.assert_allclose(np.asarray(loss), np.asarray(ref),
                               rtol=2e-3, atol=1e-4)
    print("KERNEL_OK")
</pallas_src>

<mosaic_0001>
module attributes {stable_mosaic.version = 11 : i64} {
  func.func @_parseface_loss_kernel(%arg0: i32, %arg1: i32, %arg2: memref<1x3x8x128xf32, #tpu.memory_space<vmem>>, %arg3: memref<8x128xf32, #tpu.memory_space<vmem>>, %arg4: memref<11x3xf32, #tpu.memory_space<smem>>, %arg5: memref<11xf32, #tpu.memory_space<smem>>, %arg6: memref<1x1x8x128xf32, #tpu.memory_space<vmem>>) attributes {dimension_semantics = [#tpu.dimension_semantics<parallel>, #tpu.dimension_semantics<parallel>], iteration_bounds = array<i64: 1, 2>, scalar_prefetch = 0 : i64, scratch_operands = 0 : i64, tpu.core_type = #tpu.core_type<tc>, window_params = [{transform_indices = @transform_0, window_bounds = array<i64: 1, 3, 8, 128>}, {transform_indices = @transform_1, window_bounds = array<i64: 8, 128>}, {transform_indices = @transform_2, window_bounds = array<i64: 11, 3>}, {transform_indices = @transform_3, window_bounds = array<i64: 11>}, {transform_indices = @transform_4, window_bounds = array<i64: 1, 1, 8, 128>}]} {
    %c0 = arith.constant 0 : index
    %c0_0 = arith.constant 0 : index
    %c0_1 = arith.constant 0 : index
    %c0_2 = arith.constant 0 : index
    %0 = vector.load %arg2[%c0, %c0_0, %c0_1, %c0_2] : memref<1x3x8x128xf32, #tpu.memory_space<vmem>>, vector<1x1x8x128xf32>
    %1 = vector.shape_cast %0 : vector<1x1x8x128xf32> to vector<8x128xf32>
    %c0_3 = arith.constant 0 : index
    %c1 = arith.constant 1 : index
    %c0_4 = arith.constant 0 : index
    %c0_5 = arith.constant 0 : index
    %2 = vector.load %arg2[%c0_3, %c1, %c0_4, %c0_5] : memref<1x3x8x128xf32, #tpu.memory_space<vmem>>, vector<1x1x8x128xf32>
    %3 = vector.shape_cast %2 : vector<1x1x8x128xf32> to vector<8x128xf32>
    %c0_6 = arith.constant 0 : index
    %c2 = arith.constant 2 : index
    %c0_7 = arith.constant 0 : index
    %c0_8 = arith.constant 0 : index
    %4 = vector.load %arg2[%c0_6, %c2, %c0_7, %c0_8] : memref<1x3x8x128xf32, #tpu.memory_space<vmem>>, vector<1x1x8x128xf32>
    %5 = vector.shape_cast %4 : vector<1x1x8x128xf32> to vector<8x128xf32>
    %c0_9 = arith.constant 0 : index
    %c0_10 = arith.constant 0 : index
    %6 = vector.load %arg3[%c0_9, %c0_10] : memref<8x128xf32, #tpu.memory_space<vmem>>, vector<8x128xf32>
    %c0_11 = arith.constant 0 : index
    %7 = memref.load %arg5[%c0_11] : memref<11xf32, #tpu.memory_space<smem>>
    %c0_12 = arith.constant 0 : index
    %c0_13 = arith.constant 0 : index
    %8 = memref.load %arg4[%c0_12, %c0_13] : memref<11x3xf32, #tpu.memory_space<smem>>
    %9 = vector.broadcast %8 : f32 to vector<8x128xf32>
    %10 = arith.mulf %9, %1 : vector<8x128xf32>
    %11 = vector.broadcast %7 : f32 to vector<8x128xf32>
    %12 = arith.addf %11, %10 : vector<8x128xf32>
    %c0_14 = arith.constant 0 : index
    %c1_15 = arith.constant 1 : index
    %13 = memref.load %arg4[%c0_14, %c1_15] : memref<11x3xf32, #tpu.memory_space<smem>>
    %14 = vector.broadcast %13 : f32 to vector<8x128xf32>
    %15 = arith.mulf %14, %3 : vector<8x128xf32>
    %16 = arith.addf %12, %15 : vector<8x128xf32>
    %c0_16 = arith.constant 0 : index
    %c2_17 = arith.constant 2 : index
    %17 = memref.load %arg4[%c0_16, %c2_17] : memref<11x3xf32, #tpu.memory_space<smem>>
    %18 = vector.broadcast %17 : f32 to vector<8x128xf32>
    %19 = arith.mulf %18, %5 : vector<8x128xf32>
    %20 = arith.addf %16, %19 : vector<8x128xf32>
    %c1_18 = arith.constant 1 : index
    %21 = memref.load %arg5[%c1_18] : memref<11xf32, #tpu.memory_space<smem>>
    %c1_19 = arith.constant 1 : index
    %c0_20 = arith.constant 0 : index
    %22 = memref.load %arg4[%c1_19, %c0_20] : memref<11x3xf32, #tpu.memory_space<smem>>
    %23 = vector.broadcast %22 : f32 to vector<8x128xf32>
    %24 = arith.mulf %23, %1 : vector<8x128xf32>
    %25 = vector.broadcast %21 : f32 to vector<8x128xf32>
    %26 = arith.addf %25, %24 : vector<8x128xf32>
    %c1_21 = arith.constant 1 : index
    %c1_22 = arith.constant 1 : index
    %27 = memref.load %arg4[%c1_21, %c1_22] : memref<11x3xf32, #tpu.memory_space<smem>>
    %28 = vector.broadcast %27 : f32 to vector<8x128xf32>
    %29 = arith.mulf %28, %3 : vector<8x128xf32>
    %30 = arith.addf %26, %29 : vector<8x128xf32>
    %c1_23 = arith.constant 1 : index
    %c2_24 = arith.constant 2 : index
    %31 = memref.load %arg4[%c1_23, %c2_24] : memref<11x3xf32, #tpu.memory_space<smem>>
    %32 = vector.broadcast %31 : f32 to vector<8x128xf32>
    %33 = arith.mulf %32, %5 : vector<8x128xf32>
    %34 = arith.addf %30, %33 : vector<8x128xf32>
    %c2_25 = arith.constant 2 : index
    %35 = memref.load %arg5[%c2_25] : memref<11xf32, #tpu.memory_space<smem>>
    %c2_26 = arith.constant 2 : index
    %c0_27 = arith.constant 0 : index
    %36 = memref.load %arg4[%c2_26, %c0_27] : memref<11x3xf32, #tpu.memory_space<smem>>
    %37 = vector.broadcast %36 : f32 to vector<8x128xf32>
    %38 = arith.mulf %37, %1 : vector<8x128xf32>
    %39 = vector.broadcast %35 : f32 to vector<8x128xf32>
    %40 = arith.addf %39, %38 : vector<8x128xf32>
    %c2_28 = arith.constant 2 : index
    %c1_29 = arith.constant 1 : index
    %41 = memref.load %arg4[%c2_28, %c1_29] : memref<11x3xf32, #tpu.memory_space<smem>>
    %42 = vector.broadcast %41 : f32 to vector<8x128xf32>
    %43 = arith.mulf %42, %3 : vector<8x128xf32>
    %44 = arith.addf %40, %43 : vector<8x128xf32>
    %c2_30 = arith.constant 2 : index
    %c2_31 = arith.constant 2 : index
    %45 = memref.load %arg4[%c2_30, %c2_31] : memref<11x3xf32, #tpu.memory_space<smem>>
    %46 = vector.broadcast %45 : f32 to vector<8x128xf32>
    %47 = arith.mulf %46, %5 : vector<8x128xf32>
    %48 = arith.addf %44, %47 : vector<8x128xf32>
    %c3 = arith.constant 3 : index
    %49 = memref.load %arg5[%c3] : memref<11xf32, #tpu.memory_space<smem>>
    %c3_32 = arith.constant 3 : index
    %c0_33 = arith.constant 0 : index
    %50 = memref.load %arg4[%c3_32, %c0_33] : memref<11x3xf32, #tpu.memory_space<smem>>
    %51 = vector.broadcast %50 : f32 to vector<8x128xf32>
    %52 = arith.mulf %51, %1 : vector<8x128xf32>
    %53 = vector.broadcast %49 : f32 to vector<8x128xf32>
    %54 = arith.addf %53, %52 : vector<8x128xf32>
    %c3_34 = arith.constant 3 : index
    %c1_35 = arith.constant 1 : index
    %55 = memref.load %arg4[%c3_34, %c1_35] : memref<11x3xf32, #tpu.memory_space<smem>>
    %56 = vector.broadcast %55 : f32 to vector<8x128xf32>
    %57 = arith.mulf %56, %3 : vector<8x128xf32>
    %58 = arith.addf %54, %57 : vector<8x128xf32>
    %c3_36 = arith.constant 3 : index
    %c2_37 = arith.constant 2 : index
    %59 = memref.load %arg4[%c3_36, %c2_37] : memref<11x3xf32, #tpu.memory_space<smem>>
    %60 = vector.broadcast %59 : f32 to vector<8x128xf32>
    %61 = arith.mulf %60, %5 : vector<8x128xf32>
    %62 = arith.addf %58, %61 : vector<8x128xf32>
    %c4 = arith.constant 4 : index
    %63 = memref.load %arg5[%c4] : memref<11xf32, #tpu.memory_space<smem>>
    %c4_38 = arith.constant 4 : index
    %c0_39 = arith.constant 0 : index
    %64 = memref.load %arg4[%c4_38, %c0_39] : memref<11x3xf32, #tpu.memory_space<smem>>
    %65 = vector.broadcast %64 : f32 to vector<8x128xf32>
    %66 = arith.mulf %65, %1 : vector<8x128xf32>
    %67 = vector.broadcast %63 : f32 to vector<8x128xf32>
    %68 = arith.addf %67, %66 : vector<8x128xf32>
    %c4_40 = arith.constant 4 : index
    %c1_41 = arith.constant 1 : index
    %69 = memref.load %arg4[%c4_40, %c1_41] : memref<11x3xf32, #tpu.memory_space<smem>>
    %70 = vector.broadcast %69 : f32 to vector<8x128xf32>
    %71 = arith.mulf %70, %3 : vector<8x128xf32>
    %72 = arith.addf %68, %71 : vector<8x128xf32>
    %c4_42 = arith.constant 4 : index
    %c2_43 = arith.constant 2 : index
    %73 = memref.load %arg4[%c4_42, %c2_43] : memref<11x3xf32, #tpu.memory_space<smem>>
    %74 = vector.broadcast %73 : f32 to vector<8x128xf32>
    %75 = arith.mulf %74, %5 : vector<8x128xf32>
    %76 = arith.addf %72, %75 : vector<8x128xf32>
    %c5 = arith.constant 5 : index
    %77 = memref.load %arg5[%c5] : memref<11xf32, #tpu.memory_space<smem>>
    %c5_44 = arith.constant 5 : index
    %c0_45 = arith.constant 0 : index
    %78 = memref.load %arg4[%c5_44, %c0_45] : memref<11x3xf32, #tpu.memory_space<smem>>
    %79 = vector.broadcast %78 : f32 to vector<8x128xf32>
    %80 = arith.mulf %79, %1 : vector<8x128xf32>
    %81 = vector.broadcast %77 : f32 to vector<8x128xf32>
    %82 = arith.addf %81, %80 : vector<8x128xf32>
    %c5_46 = arith.constant 5 : index
    %c1_47 = arith.constant 1 : index
    %83 = memref.load %arg4[%c5_46, %c1_47] : memref<11x3xf32, #tpu.memory_space<smem>>
    %84 = vector.broadcast %83 : f32 to vector<8x128xf32>
    %85 = arith.mulf %84, %3 : vector<8x128xf32>
    %86 = arith.addf %82, %85 : vector<8x128xf32>
    %c5_48 = arith.constant 5 : index
    %c2_49 = arith.constant 2 : index
    %87 = memref.load %arg4[%c5_48, %c2_49] : memref<11x3xf32, #tpu.memory_space<smem>>
    %88 = vector.broadcast %87 : f32 to vector<8x128xf32>
    %89 = arith.mulf %88, %5 : vector<8x128xf32>
    %90 = arith.addf %86, %89 : vector<8x128xf32>
    %c6 = arith.constant 6 : index
    %91 = memref.load %arg5[%c6] : memref<11xf32, #tpu.memory_space<smem>>
    %c6_50 = arith.constant 6 : index
    %c0_51 = arith.constant 0 : index
    %92 = memref.load %arg4[%c6_50, %c0_51] : memref<11x3xf32, #tpu.memory_space<smem>>
    %93 = vector.broadcast %92 : f32 to vector<8x128xf32>
    %94 = arith.mulf %93, %1 : vector<8x128xf32>
    %95 = vector.broadcast %91 : f32 to vector<8x128xf32>
    %96 = arith.addf %95, %94 : vector<8x128xf32>
    %c6_52 = arith.constant 6 : index
    %c1_53 = arith.constant 1 : index
    %97 = memref.load %arg4[%c6_52, %c1_53] : memref<11x3xf32, #tpu.memory_space<smem>>
    %98 = vector.broadcast %97 : f32 to vector<8x128xf32>
    %99 = arith.mulf %98, %3 : vector<8x128xf32>
    %100 = arith.addf %96, %99 : vector<8x128xf32>
    %c6_54 = arith.constant 6 : index
    %c2_55 = arith.constant 2 : index
    %101 = memref.load %arg4[%c6_54, %c2_55] : memref<11x3xf32, #tpu.memory_space<smem>>
    %102 = vector.broadcast %101 : f32 to vector<8x128xf32>
    %103 = arith.mulf %102, %5 : vector<8x128xf32>
    %104 = arith.addf %100, %103 : vector<8x128xf32>
    %c7 = arith.constant 7 : index
    %105 = memref.load %arg5[%c7] : memref<11xf32, #tpu.memory_space<smem>>
    %c7_56 = arith.constant 7 : index
    %c0_57 = arith.constant 0 : index
    %106 = memref.load %arg4[%c7_56, %c0_57] : memref<11x3xf32, #tpu.memory_space<smem>>
    %107 = vector.broadcast %106 : f32 to vector<8x128xf32>
    %108 = arith.mulf %107, %1 : vector<8x128xf32>
    %109 = vector.broadcast %105 : f32 to vector<8x128xf32>
    %110 = arith.addf %109, %108 : vector<8x128xf32>
    %c7_58 = arith.constant 7 : index
    %c1_59 = arith.constant 1 : index
    %111 = memref.load %arg4[%c7_58, %c1_59] : memref<11x3xf32, #tpu.memory_space<smem>>
    %112 = vector.broadcast %111 : f32 to vector<8x128xf32>
    %113 = arith.mulf %112, %3 : vector<8x128xf32>
    %114 = arith.addf %110, %113 : vector<8x128xf32>
    %c7_60 = arith.constant 7 : index
    %c2_61 = arith.constant 2 : index
    %115 = memref.load %arg4[%c7_60, %c2_61] : memref<11x3xf32, #tpu.memory_space<smem>>
    %116 = vector.broadcast %115 : f32 to vector<8x128xf32>
    %117 = arith.mulf %116, %5 : vector<8x128xf32>
    %118 = arith.addf %114, %117 : vector<8x128xf32>
    %c8 = arith.constant 8 : index
    %119 = memref.load %arg5[%c8] : memref<11xf32, #tpu.memory_space<smem>>
    %c8_62 = arith.constant 8 : index
    %c0_63 = arith.constant 0 : index
    %120 = memref.load %arg4[%c8_62, %c0_63] : memref<11x3xf32, #tpu.memory_space<smem>>
    %121 = vector.broadcast %120 : f32 to vector<8x128xf32>
    %122 = arith.mulf %121, %1 : vector<8x128xf32>
    %123 = vector.broadcast %119 : f32 to vector<8x128xf32>
    %124 = arith.addf %123, %122 : vector<8x128xf32>
    %c8_64 = arith.constant 8 : index
    %c1_65 = arith.constant 1 : index
    %125 = memref.load %arg4[%c8_64, %c1_65] : memref<11x3xf32, #tpu.memory_space<smem>>
    %126 = vector.broadcast %125 : f32 to vector<8x128xf32>
    %127 = arith.mulf %126, %3 : vector<8x128xf32>
    %128 = arith.addf %124, %127 : vector<8x128xf32>
    %c8_66 = arith.constant 8 : index
    %c2_67 = arith.constant 2 : index
    %129 = memref.load %arg4[%c8_66, %c2_67] : memref<11x3xf32, #tpu.memory_space<smem>>
    %130 = vector.broadcast %129 : f32 to vector<8x128xf32>
    %131 = arith.mulf %130, %5 : vector<8x128xf32>
    %132 = arith.addf %128, %131 : vector<8x128xf32>
    %c9 = arith.constant 9 : index
    %133 = memref.load %arg5[%c9] : memref<11xf32, #tpu.memory_space<smem>>
    %c9_68 = arith.constant 9 : index
    %c0_69 = arith.constant 0 : index
    %134 = memref.load %arg4[%c9_68, %c0_69] : memref<11x3xf32, #tpu.memory_space<smem>>
    %135 = vector.broadcast %134 : f32 to vector<8x128xf32>
    %136 = arith.mulf %135, %1 : vector<8x128xf32>
    %137 = vector.broadcast %133 : f32 to vector<8x128xf32>
    %138 = arith.addf %137, %136 : vector<8x128xf32>
    %c9_70 = arith.constant 9 : index
    %c1_71 = arith.constant 1 : index
    %139 = memref.load %arg4[%c9_70, %c1_71] : memref<11x3xf32, #tpu.memory_space<smem>>
    %140 = vector.broadcast %139 : f32 to vector<8x128xf32>
    %141 = arith.mulf %140, %3 : vector<8x128xf32>
    %142 = arith.addf %138, %141 : vector<8x128xf32>
    %c9_72 = arith.constant 9 : index
    %c2_73 = arith.constant 2 : index
    %143 = memref.load %arg4[%c9_72, %c2_73] : memref<11x3xf32, #tpu.memory_space<smem>>
    %144 = vector.broadcast %143 : f32 to vector<8x128xf32>
    %145 = arith.mulf %144, %5 : vector<8x128xf32>
    %146 = arith.addf %142, %145 : vector<8x128xf32>
    %c10 = arith.constant 10 : index
    %147 = memref.load %arg5[%c10] : memref<11xf32, #tpu.memory_space<smem>>
    %c10_74 = arith.constant 10 : index
    %c0_75 = arith.constant 0 : index
    %148 = memref.load %arg4[%c10_74, %c0_75] : memref<11x3xf32, #tpu.memory_space<smem>>
    %149 = vector.broadcast %148 : f32 to vector<8x128xf32>
    %150 = arith.mulf %149, %1 : vector<8x128xf32>
    %151 = vector.broadcast %147 : f32 to vector<8x128xf32>
    %152 = arith.addf %151, %150 : vector<8x128xf32>
    %c10_76 = arith.constant 10 : index
    %c1_77 = arith.constant 1 : index
    %153 = memref.load %arg4[%c10_76, %c1_77] : memref<11x3xf32, #tpu.memory_space<smem>>
    %154 = vector.broadcast %153 : f32 to vector<8x128xf32>
    %155 = arith.mulf %154, %3 : vector<8x128xf32>
    %156 = arith.addf %152, %155 : vector<8x128xf32>
    %c10_78 = arith.constant 10 : index
    %c2_79 = arith.constant 2 : index
    %157 = memref.load %arg4[%c10_78, %c2_79] : memref<11x3xf32, #tpu.memory_space<smem>>
    %158 = vector.broadcast %157 : f32 to vector<8x128xf32>
    %159 = arith.mulf %158, %5 : vector<8x128xf32>
    %160 = arith.addf %156, %159 : vector<8x128xf32>
    %161 = arith.maximumf %20, %34 : vector<8x128xf32>
    %162 = arith.maximumf %161, %48 : vector<8x128xf32>
    %163 = arith.maximumf %162, %62 : vector<8x128xf32>
    %164 = arith.maximumf %163, %76 : vector<8x128xf32>
    %165 = arith.maximumf %164, %90 : vector<8x128xf32>
    %166 = arith.maximumf %165, %104 : vector<8x128xf32>
    %167 = arith.maximumf %166, %118 : vector<8x128xf32>
    %168 = arith.maximumf %167, %132 : vector<8x128xf32>
    %169 = arith.maximumf %168, %146 : vector<8x128xf32>
    %170 = arith.maximumf %169, %160 : vector<8x128xf32>
    %171 = arith.subf %20, %170 : vector<8x128xf32>
    %172 = math.exp %171 : vector<8x128xf32>
    %173 = arith.subf %34, %170 : vector<8x128xf32>
    %174 = math.exp %173 : vector<8x128xf32>
    %175 = arith.addf %172, %174 : vector<8x128xf32>
    %176 = arith.subf %48, %170 : vector<8x128xf32>
    %177 = math.exp %176 : vector<8x128xf32>
    %178 = arith.addf %175, %177 : vector<8x128xf32>
    %179 = arith.subf %62, %170 : vector<8x128xf32>
    %180 = math.exp %179 : vector<8x128xf32>
    %181 = arith.addf %178, %180 : vector<8x128xf32>
    %182 = arith.subf %76, %170 : vector<8x128xf32>
    %183 = math.exp %182 : vector<8x128xf32>
    %184 = arith.addf %181, %183 : vector<8x128xf32>
    %185 = arith.subf %90, %170 : vector<8x128xf32>
    %186 = math.exp %185 : vector<8x128xf32>
    %187 = arith.addf %184, %186 : vector<8x128xf32>
    %188 = arith.subf %104, %170 : vector<8x128xf32>
    %189 = math.exp %188 : vector<8x128xf32>
    %190 = arith.addf %187, %189 : vector<8x128xf32>
    %191 = arith.subf %118, %170 : vector<8x128xf32>
    %192 = math.exp %191 : vector<8x128xf32>
    %193 = arith.addf %190, %192 : vector<8x128xf32>
    %194 = arith.subf %132, %170 : vector<8x128xf32>
    %195 = math.exp %194 : vector<8x128xf32>
    %196 = arith.addf %193, %195 : vector<8x128xf32>
    %197 = arith.subf %146, %170 : vector<8x128xf32>
    %198 = math.exp %197 : vector<8x128xf32>
    %199 = arith.addf %196, %198 : vector<8x128xf32>
    %200 = arith.subf %160, %170 : vector<8x128xf32>
    %201 = math.exp %200 : vector<8x128xf32>
    %202 = arith.addf %199, %201 : vector<8x128xf32>
    %203 = arith.divf %201, %202 : vector<8x128xf32>
    %cst = arith.constant 1.000000e+00 : f32
    %204 = vector.broadcast %cst : f32 to vector<8x128xf32>
    %205 = arith.subf %204, %6 : vector<8x128xf32>
    %206 = arith.mulf %203, %205 : vector<8x128xf32>
    %cst_80 = arith.constant 0.000000e+00 : f32
    %207 = vector.broadcast %cst_80 : f32 to vector<8x128xf32>
    %208 = arith.subf %207, %203 : vector<8x128xf32>
    %209 = math.exp %208 : vector<8x128xf32>
    %210 = math.log1p %209 : vector<8x128xf32>
    %211 = arith.addf %206, %210 : vector<8x128xf32>
    %212 = vector.shape_cast %211 : vector<8x128xf32> to vector<1x8x128xf32>
    %cst_81 = arith.constant dense<0.000000e+00> : vector<8x128xf32>
    %213 = vector.multi_reduction <add>, %212, %cst_81 [0] : vector<1x8x128xf32> to vector<8x128xf32>
    %214 = vector.shape_cast %213 : vector<8x128xf32> to vector<1x1x8x128xf32>
    %c0_82 = arith.constant 0 : index
    %c0_83 = arith.constant 0 : index
    %c0_84 = arith.constant 0 : index
    %c0_85 = arith.constant 0 : index
    %215 = vector.load %arg6[%c0_82, %c0_83, %c0_84, %c0_85] : memref<1x1x8x128xf32, #tpu.memory_space<vmem>>, vector<1x1x8x128xf32>
    tpu.vector_store %arg6[%c0_82, %c0_83, %c0_84, %c0_85], %214 {strides = array<i32>} : memref<1x1x8x128xf32, #tpu.memory_space<vmem>>, vector<1x1x8x128xf32>,
    return
  }
  func.func @transform_0(%arg0: i32, %arg1: i32) -> (i32, i32, i32, i32) {
    %c0_i32 = arith.constant 0 : i32
    %c0_i32_0 = arith.constant 0 : i32
    %c0_i32_1 = arith.constant 0 : i32
    return %arg1, %c0_i32, %arg0, %c0_i32_0 : i32, i32, i32, i32
  }
  func.func @transform_1(%arg0: i32, %arg1: i32) -> (i32, i32) {
    %c0_i32 = arith.constant 0 : i32
    %c0_i32_0 = arith.constant 0 : i32
    return %arg0, %c0_i32 : i32, i32
  }
  func.func @transform_2(%arg0: i32, %arg1: i32) -> (i32, i32) {
    %c0_i32 = arith.constant 0 : i32
    %c0_i32_0 = arith.constant 0 : i32
    %c0_i32_1 = arith.constant 0 : i32
    return %c0_i32, %c0_i32_0 : i32, i32
  }
  func.func @transform_3(%arg0: i32, %arg1: i32) -> i32 {
    %c0_i32 = arith.constant 0 : i32
    %c0_i32_0 = arith.constant 0 : i32
    return %c0_i32 : i32
  }
  func.func @transform_4(%arg0: i32, %arg1: i32) -> (i32, i32, i32, i32) {
    %c0_i32 = arith.constant 0 : i32
    %c0_i32_0 = arith.constant 0 : i32
    %c0_i32_1 = arith.constant 0 : i32
    return %arg0, %arg1, %c0_i32, %c0_i32_0 : i32, i32, i32, i32
  }
}

</mosaic_0001>

<bundles_post_ra>
// kernel: tpu_custom_call.1
= control target key start
LH: loop header
LB: loop body
LE: loop exit
PB: predicated region body
PF: predicated region fallthrough
CT: control target
= control target key end

     0   :  { %s1419_s0 = inlined_call_operand.hbm [shape: f32[2,3,8,128], index: 0, kind: input, shape index: {}]   ;;  %s1420_s1 = inlined_call_operand.vmem [shape: f32[8,128], index: 1, kind: input, shape index: {}]   ;;  %s1421_s2 = inlined_call_operand.vmem [shape: f32[11,3], index: 2, kind: input, shape index: {}]   ;;  %s1422_s3 = inlined_call_operand.vmem [shape: f32[11], index: 3, kind: input, shape index: {}]   ;;  %s1423_s4 = inlined_call_operand.hbm [shape: f32[1,2,8,128], index: 4, kind: output, shape index: {}]  }
   0x1   :  { %1431 = sst [smem:[#allocation16_spill]] %s1419_s0 }
   0x2   :  { %1432 = sst [smem:[#allocation17_spill]] %s1421_s2 }
   0x3   :  { %1433 = sst [smem:[#allocation18_spill]] %s1422_s3 }
   0x4   :  { %9 = vsyncpa [#allocation3], 0 }
   0x5   :  { %11 = vsyncpa [#allocation3 + $0x1], 0 }
   0x6   :  { %12 = vsyncpa [#allocation5], 0 }
   0x7   :  { %13 = vsyncpa [#allocation8], 0 }
   0x8   :  { %14 = vsyncpa [#allocation4], 0 }
   0x9   :  { %16 = vsyncpa [#allocation4 + $0x1], 0  ;;  %s1005_s15 = smov 0   ;;  %s1007_s16 = smov 0  }
   0xa   :  { %s1009_s17 = smov 0   ;;  %s1011_s18 = smov 0  }
   0xb   :  { %s1013_s19 = smov 0   ;;  %s1015_s20 = smov 0  }
   0xc LB: > { %1434 = sst [smem:[#allocation14_spill]] %s968_s19  ;;  %s646_s21 = sadd.s32 4294967295, %s972_s20   ;;  %s972_s20 = sphi %s1015_s20, %s22_s20   ;;  %s968_s19 = sphi %s1013_s19, %s1454_s19   ;;  %s964_s18 = sphi %s1011_s18, %s1453_s18   ;;  %s960_s17 = sphi %s1009_s17, %s1457_s17   ;;  %s956_s16 = sphi %s1007_s16, %s1456_s16   ;;  %s952_s15 = sphi %s1005_s15, %s1455_s15  }
   0xd   : > { %s647_s22 = sadd.s32 4294967294, %s972_s20   ;;  %p56_p0 = scmp.ne.s32.totalorder %s956_s16, %s952_s15 }
   0xe   : > { %p1039_p1 = scmp.eq.s32.totalorder %s646_s21, 0  ;;  %p1043_p2 = scmp.eq.s32.totalorder %s646_s21, 1 }
   0xf   : > { %p156_p3 = scmp.eq.s32.totalorder %s647_s22, 1  ;;  %p648_p5 = scmp.ge.s32.totalorder %s972_s20, 1 }
  0x10   : > { %s1435_s23 = scalar_select %p1039_p1, 1, 0 }
  0x11   : > { %p1049_p4 = por %p1039_p1, %p56_p0  ;;  %p1054_p6 = por %p156_p3, %p56_p0 }
  0x12   : > { %p163_p7 = scmp.lt.s32.totalorder %s972_s20, 3  ;;  %s1439_s2 = sld [smem:[#allocation17_spill]] }
  0x13   : > { %s1437_s25 = scalar_select %p1049_p4, 1, 0 }
  0x14   : > { %s1438_s26 = scalar_select %p1054_p6, 1, 0 }
  0x15   : > { %p1062_p8 = pnand %p648_p5, %p163_p7  ;;  %s1441_s3 = sld [smem:[#allocation18_spill]] }
  0x17   : > { %p721_p9 = pneg %p1062_p8 }
  0x18   : > { %s182_s29 = sshll.u32 %s1439_s2, 4  ;;  %s183_s29 = int_to_ptr.vmem [resolvable:$true] %s182_s29 }
  0x19   : > { %p1074_p11 = pnand %p721_p9, %p1039_p1  ;;  %s822_s9 = scalar_lea.vmem %s183_s29, 256 }
  0x1a   : > { %p823_p12 = scmp.ne.s32.totalorder %s183_s29, %s822_s9  ;;  %p830_p5 = scmp.lt.s32.totalorder %s183_s29, %s183_s29 }
  0x1b   : > { %s196_s7 = sshll.u32 %s1441_s3, 4  ;;  %p824_p13 = pneg %p1074_p11  ;;  %s197_s7 = int_to_ptr.vmem [resolvable:$true] %s196_s7 }
  0x1c   : > { %p831_p7 = scmp.lt.s32.totalorder %s822_s9, %s822_s9 }
  0x1d   : > { %p825_p0 = pnand %p824_p13, %p823_p12 }
  0x1e   : > { %p832_p10 = por %p831_p7, %p830_p5 }
  0x1f   : > { %p826_p3 = pneg %p825_p0 }
  0x21   : > { %p833_p6 = pnand %p832_p10, %p826_p3 }
  0x23   : > { %836 = shalt.err (!%p833_p6)
}
  0x24   : > { %s974_s10 = smov [#allocation6]   ;;  %s1426_s11 = smov 128  }
  0x25   : > { %s976_s12 = smov 8   ;;  %s837_s13 = scalar_lea.vmem %s197_s7, 16 }
  0x26   : > { %724 = dma.vmem_to_smem (!%p1074_p11), %s183_s29, 256, %s974_s10, [#allocation5], %s1426_s11, %s1426_s11, %s976_s12  }
  0x27   : > { %p838_p9 = scmp.ne.s32.totalorder %s197_s7, %s837_s13  ;;  %p845_p1 = scmp.lt.s32.totalorder %s197_s7, %s197_s7 }
  0x28   : > { %p846_p5 = scmp.lt.s32.totalorder %s837_s13, %s837_s13 }
  0x29   : > { %p840_p12 = pnand %p838_p9, %p824_p13 }
  0x2a   : > { %p847_p10 = por %p846_p5, %p845_p1 }
  0x2b   : > { %p841_p0 = pneg %p840_p12 }
  0x2d   : > { %p848_p6 = pnand %p847_p10, %p841_p0 }
  0x2f   : > { %851 = shalt.err (!%p848_p6)
}
  0x30   : > { %s977_s14 = smov [#allocation7]   ;;  %s31_s21 = sadd.s32 1, %s968_s19 }
  0x31   : > { %727 = dma.vmem_to_smem (!%p1074_p11), %s197_s7, 16, %s977_s14, [#allocation8]  }
  0x32   : > { %s43_s22 = sadd.s32 1, %s960_s17  ;;  %p32_p1 = scmp.ge.s32.totalorder %s31_s21, 2 }
  0x33   : > { %p50_p13 = scmp.ne.s32.totalorder %s960_s17, %s956_s16  ;;  %p51_p3 = scmp.eq.s32.totalorder %s972_s20, 0 }
  0x34   : > { %p738_p7 = scmp.lt.s32.totalorder %s972_s20, 2  ;;  %s1459_s21 = smov (%p32_p1, %s31_s21), 0 }
  0x35   : > { %1443 = sst [smem:[#allocation15_spill]] %s1459_s21  ;;  %p52_p9 = por %p51_p3, %p50_p13 }
  0x36   : > { %p1103_p12 = por %p1043_p2, %p50_p13  ;;  %s38_s28 = ssub.s32 %s968_s19, %s1459_s21 }
  0x37   : > { %s207_s29 = sand.u32 1, %s960_s17   ;;  %p41_p0 = scmp.eq.s32.totalorder %s38_s28, 0 }
  0x38   : > { %s1444_s27 = scalar_select %p1103_p12, 1, 0 }
  0x39   : > { %s706_s5 = smul.u32 24, %s207_s29  ;;  %p1110_p11 = pnand %p738_p7, %p52_p9 }
  0x3a   : > { %s1115_s7 = scalar_select %p41_p0, %s960_s17, %s43_s22  }
  0x3b   : > { %s707_s8 = smul.u32 384, %s968_s19  ;;  %s211_s9 = scalar_lea.vmem [#allocation2], %s706_s5 }
  0x3c   : > { %s219_s10 = sshll.u32 %s211_s9, 4  ;;  %s1446_s0 = sld [smem:[#allocation16_spill]]  ;;  %s1123_s10 = int_to_ptr.vmem [resolvable:$true] %s219_s10 }
  0x3d   : > { %s1125_s28 = scalar_lea.sflag [#allocation3], %s207_s29  ;;  %p854_p5 = pneg %p1110_p11 }
  0x42   : > { %s1121_s14 = scalar_lea.hbm %s1446_s0, %s707_s8  ;;  %s857_s8 = scalar_lea.hbm %s1446_s0, 768 }
  0x43   : > { %s852_s11 = scalar_lea.hbm %s1121_s14, 384  ;;  %p858_p1 = scmp.lt.u32.totalorder %s1121_s14, %s1446_s0 }
  0x44   : > { %p853_p2 = scmp.ne.s32.totalorder %s1121_s14, %s852_s11  ;;  %p859_p13 = scmp.lt.u32.totalorder %s857_s8, %s852_s11 }
  0x45   : > { %p861_p7 = scmp.lt.u32.totalorder %s852_s11, %s1121_s14 }
  0x46   : > { %p855_p10 = pnand %p854_p5, %p853_p2  ;;  %p860_p3 = por %p859_p13, %p858_p1 }
  0x48   : > { %p856_p6 = pneg %p855_p10  ;;  %p862_p9 = por %p861_p7, %p860_p3 }
  0x4a   : > { %p863_p0 = pnand %p862_p9, %p856_p6 }
  0x4c   : > { %866 = shalt.err (!%p863_p0)
}
  0x4d   : > { %s867_s29 = scalar_lea.vmem %s1123_s10, 384  ;;  %s978_s13 = smov [#allocation2]  }
  0x4e   : > { %p868_p2 = scmp.ne.s32.totalorder %s1123_s10, %s867_s29  ;;  %s872_s22 = sshll.u32 %s978_s13, 4  ;;  %s873_s22 = int_to_ptr.vmem [resolvable:$false] %s872_s22 }
  0x4f   : > { %s874_s5 = scalar_lea.vmem %s873_s22, 768  ;;  %p875_p4 = scmp.lt.s32.totalorder %s1123_s10, %s873_s22 }
  0x50   : > { %p870_p10 = pnand %p868_p2, %p854_p5  ;;  %p876_p1 = scmp.lt.s32.totalorder %s874_s5, %s867_s29 }
  0x52   : > { %p871_p12 = pneg %p870_p10  ;;  %p877_p13 = por %p876_p1, %p875_p4 }
  0x54   : > { %p878_p3 = pnand %p877_p13, %p871_p12 }
  0x56   : > { %881 = shalt.err (!%p878_p3)
}
  0x57   : > { %s1447_s11 = smov 128   ;;  %231 = sbr.rel (%p1062_p8) target bundleno = 245 (0xf5), region = 36 }
  0x58   : > { %731 = dma.hbm_to_vmem [thread:$0]  (!%p1110_p11), %s1121_s14, 384, %s1123_s10, %s1125_s28, %s1447_s11, %s1447_s11, %s976_s12  }
  0x59   : > { %s1159_s8 = sand.u32 (!%p1062_p8), 1, %s956_s16   ;;  %p1448_p4 = scmp.ne.s32.totalorder (!%p1062_p8), %s1437_s25, 0 }
  0x5a   : > { %s708_s9 = smul.u32 (!%p1062_p8), 24, %s1159_s8  ;;  %s234_s24 = scalar_lea.sflag (!%p1062_p8), [#allocation3], %s1159_s8 }
  0x5c   : > { %s1163_s29 = scalar_lea.vmem (!%p1062_p8), [#allocation2], %s708_s9 }
  0x5e   : > { %935 = dma.done.wait (%p1448_p4), %s234_s24, 384  }
  0x5f   : > { %937 = vsyncadd (%p1448_p4), %s234_s24, 4294966912  ;;  %p1449_p12 = scmp.ne.s32.totalorder %s1435_s23, 0 }
  0x61   : > { %939 = dma.done.wait (%p1449_p12), [#allocation5], 256  }
  0x62   : > { %941 = vsyncadd (%p1449_p12), [#allocation5], 4294967040 }
  0x63   : > { %943 = dma.done.wait (%p1449_p12), [#allocation8], 16  }
  0x64   : > { %945 = vsyncadd (%p1449_p12), [#allocation8], 4294967280 }
  0x65   : > { %250 = sfence }
  0x66   : > { %s286_s30 = sld [smem:[#allocation6]]  ;;  %s1179_s25 = sld [smem:[#allocation6 + $0x1]]  ;;  %v1202_v0 = vld [vmem:[%s1163_s29] sm:$0xff]  ;;  %v1217_v6 = vld [vmem:[%s1163_s29 + $0x8] sm:$0xff]  ;;  %v1245_v23 = vld [vmem:[%s1163_s29 + $0x10] sm:$0xff] }
  0x67   : > { %s1177_s12 = sld [smem:[#allocation7]]  ;;  %s1181_s14 = sld [smem:[#allocation6 + $0x2]] }
  0x68   : > { %s663_s6 = sld [smem:[#allocation6 + $0x80]]  ;;  %s1183_s28 = sld [smem:[#allocation7 + $0x1]] }
  0x69   : > { %s667_s10 = sld [smem:[#allocation6 + $0x100]]  ;;  %s1185_s13 = sld [smem:[#allocation6 + $0x81]] }
  0x6a   : > { %s1187_s22 = sld [smem:[#allocation6 + $0x180]]  ;;  %s1189_s23 = sld [smem:[#allocation7 + $0x2]] }
  0x6b   : > { %s1191_s5 = sld [smem:[#allocation6 + $0x101]]  ;;  %s1195_s9 = sld [smem:[#allocation6 + $0x200]] }
  0x6c   : > { %s1193_s11 = sld [smem:[#allocation6 + $0x181]]  ;;  %s1197_s24 = sld [smem:[#allocation6 + $0x82]]  ;;  %v287_v1 = vstv %s286_s30  ;;  %v292_v8 = vstv %s1179_s25 }
  0x6d   : > { %s1199_s0 = sld [smem:[#allocation7 + $0x3]]  ;;  %s1204_s2 = sld [smem:[#allocation6 + $0x102]]  ;;  %v288_v4 = vmul.f32 %v287_v1, %v1202_v0  ;;  %v289_v7 = vstv %s1177_s12  ;;  %v296_v15 = vstv %s1181_s14  ;;  %v293_v20 = vmul.f32 %v1217_v6, %v292_v8 }
  0x6e   : > { %v301_v2 = vstv %s663_s6  ;;  %s1206_s3 = sld [smem:[#allocation7 + $0x4]]  ;;  %s1208_s21 = sld [smem:[#allocation6 + $0x201]]  ;;  %v303_v11 = vstv %s1183_s28  ;;  %v297_v36 = vmul.f32 %v1245_v23, %v296_v15 }
  0x6f   : > { %v315_v3 = vstv %s667_s10  ;;  %s1210_s19 = sld [smem:[#allocation6 + $0x280]]  ;;  %s1214_s30 = sld [smem:[#allocation6 + $0x182]]  ;;  %v302_v9 = vmul.f32 %v301_v2, %v1202_v0  ;;  %v306_v12 = vstv %s1185_s13  ;;  %v290_v19 = vadd.f32 %v289_v7, %v288_v4 }
  0x70   : > { %v329_v5 = vstv %s1187_s22  ;;  %v316_v10 = vmul.f32 %v315_v3, %v1202_v0  ;;  %s1223_s6 = sld [smem:[#allocation6 + $0x202]]  ;;  %v317_v13 = vstv %s1189_s23  ;;  %s1229_s10 = sld [smem:[#allocation6 + $0x300]]  ;;  %v307_v25 = vmul.f32 %v1217_v6, %v306_v12 }
  0x71   : > { %v320_v14 = vstv %s1191_s5  ;;  %v330_v16 = vmul.f32 %v329_v5, %v1202_v0  ;;  %v343_v18 = vstv %s1195_s9  ;;  %s1235_s12 = sld [smem:[#allocation7 + $0x5]]  ;;  %s1237_s25 = sld [smem:[#allocation6 + $0x281]]  ;;  %v304_v24 = vadd.f32 %v303_v11, %v302_v9 }
  0x72   : > { %v334_v17 = vstv %s1193_s11  ;;  %v310_v21 = vstv %s1197_s24  ;;  %s1242_s28 = sld [smem:[#allocation6 + $0x282]]  ;;  %v318_v26 = vadd.f32 %v317_v13, %v316_v10  ;;  %v321_v27 = vmul.f32 %v1217_v6, %v320_v14  ;;  %s1249_s14 = sld [smem:[#allocation6 + $0x301]] }
  0x73   : > { %v331_v22 = vstv %s1199_s0  ;;  %s1251_s13 = sld [smem:[#allocation6 + $0x380]]  ;;  %v324_v28 = vstv %s1204_s2  ;;  %v335_v29 = vmul.f32 %v1217_v6, %v334_v17  ;;  %v344_v30 = vmul.f32 %v343_v18, %v1202_v0  ;;  %s1256_s0 = sld [smem:[#allocation7 + $0x6]] }
  0x74   : > { %v332_v31 = vadd.f32 %v331_v22, %v330_v16  ;;  %v345_v32 = vstv %s1206_s3  ;;  %v348_v33 = vstv %s1208_s21  ;;  %s1261_s29 = sld [smem:[#allocation6 + $0x400]]  ;;  %v294_v35 = vadd.f32 %v293_v20, %v290_v19  ;;  %s1266_s2 = sld [smem:[#allocation6 + $0x302]] }
  0x75   : > { %v357_v34 = vstv %s1210_s19  ;;  %v311_v37 = vmul.f32 %v1245_v23, %v310_v21  ;;  %v338_v38 = vstv %s1214_s30  ;;  %s1268_s22 = sld [smem:[#allocation7 + $0x7]]  ;;  %v308_v39 = vadd.f32 %v307_v25, %v304_v24  ;;  %s1272_s3 = sld [smem:[#allocation6 + $0x381]] }
  0x76   : > { %v322_v40 = vadd.f32 %v321_v27, %v318_v26  ;;  %v325_v41 = vmul.f32 %v1245_v23, %v324_v28  ;;  %v352_v42 = vstv %s1223_s6  ;;  %s1274_s19 = sld [smem:[#allocation6 + $0x480]]  ;;  %v346_v43 = vadd.f32 %v345_v32, %v344_v30  ;;  %s1279_s21 = sld [smem:[#allocation6 + $0x382]] }
  0x77   : > { %v349_v44 = vmul.f32 %v1217_v6, %v348_v33  ;;  %v358_v45 = vmul.f32 %v357_v34, %v1202_v0  ;;  %v371_v46 = vstv %s1229_s10  ;;  %s1281_s23 = sld [smem:[#allocation6 + $0x401]]  ;;  %v336_v47 = vadd.f32 %v335_v29, %v332_v31  ;;  %s1286_s5 = sld [smem:[#allocation7 + $0x8]] }
  0x78   : > { %v339_v48 = vmul.f32 %v1245_v23, %v338_v38  ;;  %v359_v49 = vstv %s1235_s12  ;;  %v362_v50 = vstv %s1237_s25  ;;  %s1288_s11 = sld [smem:[#allocation6 + $0x500]]  ;;  %v1290_v51 = vadd.f32 %v297_v36, %v294_v35  ;;  %s1297_s9 = sld [smem:[#allocation7 + $0x9]] }
  0x79   : > { %v353_v52 = vmul.f32 %v1245_v23, %v352_v42  ;;  %v366_v53 = vstv %s1242_s28  ;;  %v372_v54 = vmul.f32 %v371_v46, %v1202_v0  ;;  %v376_v55 = vstv %s1249_s14  ;;  %s1299_s24 = sld [smem:[#allocation6 + $0x481]]  ;;  %s1303_s30 = sld [smem:[#allocation6 + $0x402]] }
  0x7a   : > { %v385_v56 = vstv %s1251_s13  ;;  %v350_v57 = vadd.f32 %v349_v44, %v346_v43  ;;  %v360_v58 = vadd.f32 %v359_v49, %v358_v45  ;;  %v363_v59 = vmul.f32 %v1217_v6, %v362_v50  ;;  %s1312_s6 = sld [smem:[#allocation7 + $0xa]]  ;;  %s1314_s10 = sld [smem:[#allocation6 + $0x501]] }
  0x7b   : > { %v373_v60 = vstv %s1256_s0  ;;  %v1305_v61 = vadd.f32 %v311_v37, %v308_v39  ;;  %v1307_v62 = vadd.f32 %v325_v41, %v322_v40  ;;  %v1309_v63 = vadd.f32 %v339_v48, %v336_v47  ;;  %s1323_s12 = sld [smem:[#allocation6 + $0x482]]  ;;  %s657_s13 = sshll.u32 %s1159_s8, 3 }
  0x7c   : > { %v399_v1 = vstv %s1261_s29  ;;  %v367_v2 = vmul.f32 %v1245_v23, %v366_v53  ;;  %v377_v3 = vmul.f32 %v1217_v6, %v376_v55  ;;  %v380_v4 = vstv %s1266_s2  ;;  %s1333_s25 = sld [smem:[#allocation6 + $0x502]]  ;;  %s703_s0 = sshll.u32 %s964_s18, 7 }
  0x7d   : > { %v386_v5 = vmul.f32 %v385_v56, %v1202_v0  ;;  %v374_v7 = vadd.f32 %v373_v60, %v372_v54  ;;  %v387_v8 = vstv %s1268_s22  ;;  %v390_v9 = vstv %s1272_s3  ;;  %s274_s29 = scalar_lea.vmem [#allocation9], %s657_s13  ;;  %p1450_p11 = scmp.ne.s32.totalorder %s1444_s27, 0 }
  0x7e   : > { %v413_v10 = vstv %s1274_s19  ;;  %v1325_v11 = vadd.f32 %v353_v52, %v350_v57  ;;  %v364_v12 = vadd.f32 %v363_v59, %v360_v58  ;;  %v400_v13 = vmul.f32 %v399_v1, %v1202_v0  ;;  %s527_s2 = sshll.u32 %s274_s29, 4  ;;  %s1370_s19 = scalar_lea.hbm %s1423_s4, %s703_s0  ;;  %s1372_s2 = int_to_ptr.vmem [resolvable:$true] %s527_s2 }
  0x7f   : > { %v404_v14 = vstv %s1281_s23  ;;  %v381_v15 = vmul.f32 %v1245_v23, %v380_v4  ;;  %v394_v16 = vstv %s1279_s21  ;;  %v401_v17 = vstv %s1286_s5  ;;  %s512_s21 = scalar_lea.sflag [#allocation4], %s1159_s8  ;;  %s882_s23 = scalar_lea.vmem %s1372_s2, 128 }
  0x80   : > { %v427_v18 = vstv %s1288_s11  ;;  %v388_v19 = vadd.f32 %v387_v8, %v386_v5  ;;  %v391_v20 = vmul.f32 %v1217_v6, %v390_v9  ;;  %v414_v21 = vmul.f32 %v413_v10, %v1202_v0  ;;  %p883_p8 = scmp.ne.s32.totalorder %s1372_s2, %s882_s23  ;;  %s979_s18 = smov [#allocation9]  }
  0x81   : > { %v439_v22 = vmax.f32 %v1290_v51, %v1305_v61  ;;  %v378_v24 = vadd.f32 %v377_v3, %v374_v7  ;;  %v405_v25 = vmul.f32 %v1217_v6, %v404_v14  ;;  %v415_v26 = vstv %s1297_s9  ;;  %s886_s5 = sshll.u32 %s979_s18, 4  ;;  %s887_s5 = int_to_ptr.vmem [resolvable:$false] %s886_s5 }
  0x82   : > { %v418_v27 = vstv %s1299_s24  ;;  %v402_v28 = vadd.f32 %v401_v17, %v400_v13  ;;  %v408_v29 = vstv %s1303_s30  ;;  %v428_v30 = vmul.f32 %v427_v18, %v1202_v0  ;;  %p884_p5 = pnand %p883_p8, %p1450_p11  ;;  %s888_s11 = scalar_lea.vmem %s887_s5, 256 }
  0x83   : > { %v440_v31 = vmax.f32 %v439_v22, %v1307_v62  ;;  %v368_v32 = vadd.f32 %v367_v2, %v364_v12  ;;  %v395_v33 = vmul.f32 %v1245_v23, %v394_v16  ;;  %v429_v34 = vstv %s1312_s6  ;;  %p889_p7 = scmp.lt.s32.totalorder %s1372_s2, %s887_s5  ;;  %p890_p9 = scmp.lt.s32.totalorder %s888_s11, %s882_s23 }
  0x84   : > { %v432_v35 = vstv %s1314_s10  ;;  %v392_v36 = vadd.f32 %v391_v20, %v388_v19  ;;  %v416_v37 = vadd.f32 %v415_v26, %v414_v21  ;;  %v419_v38 = vmul.f32 %v1217_v6, %v418_v27  ;;  %p885_p6 = pneg %p884_p5 }
  0x85   : > { %v441_v39 = vmax.f32 %v440_v31, %v1309_v63  ;;  %v382_v40 = vadd.f32 %v381_v15, %v378_v24  ;;  %v409_v41 = vmul.f32 %v1245_v23, %v408_v29  ;;  %v422_v42 = vstv %s1323_s12  ;;  %p891_p0 = por %p890_p9, %p889_p7 }
  0x86   : > { %v406_v43 = vadd.f32 %v405_v25, %v402_v28  ;;  %v430_v0 = vadd.f32 %v429_v34, %v428_v30  ;;  %v433_v44 = vmul.f32 %v1217_v6, %v432_v35  ;;  %v436_v46 = vstv %s1333_s25 }
  0x87   : > { %v442_v45 = vmax.f32 %v441_v39, %v1325_v11  ;;  %v396_v47 = vadd.f32 %v395_v33, %v392_v36  ;;  %v420_v48 = vadd.f32 %v419_v38, %v416_v37  ;;  %v423_v49 = vmul.f32 %v1245_v23, %v422_v42  ;;  %p892_p2 = pnand %p891_p0, %p885_p6 }
  0x88   : > { %v410_v52 = vadd.f32 %v409_v41, %v406_v43  ;;  %v434_v53 = vadd.f32 %v433_v44, %v430_v0  ;;  %v437_v54 = vmul.f32 %v1245_v23, %v436_v46 }
  0x89   : > { %v443_v50 = vmax.f32 %v442_v45, %v368_v32  ;;  %v424_v56 = vadd.f32 %v423_v49, %v420_v48 }
  0x8a   : > { %v438_v58 = vadd.f32 %v437_v54, %v434_v53 }
  0x8b   : > { %v444_v55 = vmax.f32 %v443_v50, %v382_v40 }
  0x8d   : > { %v445_v57 = vmax.f32 %v444_v55, %v396_v47 }
  0x8f   : > { %v446_v59 = vmax.f32 %v445_v57, %v410_v52 }
  0x91   : > { %v447_v60 = vmax.f32 %v446_v59, %v424_v56 }
  0x93   : > { %v448_v1 = vmax.f32 %v447_v60, %v438_v58 }
  0x95   : > { %v449_v6 = vsub.f32 %v1290_v51, %v448_v1  ;;  %v452_v2 = vsub.f32 %v1305_v61, %v448_v1  ;;  %v456_v3 = vsub.f32 %v1307_v62, %v448_v1  ;;  %v460_v4 = vsub.f32 %v1309_v63, %v448_v1 }
  0x96   : > { %v464_v5 = vsub.f32 %v1325_v11, %v448_v1  ;;  %v468_v10 = vsub.f32 %v368_v32, %v448_v1  ;;  %v472_v13 = vsub.f32 %v382_v40, %v448_v1  ;;  %v476_v14 = vsub.f32 %v396_v47, %v448_v1  ;;  %v284_v47 = vld [vmem:[%s1420_s1] sm:$0xff] }
  0x97   : > { %v450_v7 = vmul.f32 1.442695, %v449_v6  ;;  %v453_v8 = vmul.f32 1.442695, %v452_v2  ;;  %v457_v23 = vmul.f32 1.442695, %v456_v3  ;;  %v480_v62 = vsub.f32 %v410_v52, %v448_v1 }
  0x98   : > { %v461_v9 = vmul.f32 1.442695, %v460_v4  ;;  %v465_v12 = vmul.f32 1.442695, %v464_v5  ;;  %v469_v51 = vmul.f32 1.442695, %v468_v10  ;;  %v484_v15 = vsub.f32 %v424_v56, %v448_v1 }
  0x99   : > { %794 = vpow2.f32 %v450_v7  ;;  %v473_v61 = vmul.f32 1.442695, %v472_v13  ;;  %v477_v63 = vmul.f32 1.442695, %v476_v14  ;;  %v481_v11 = vmul.f32 1.442695, %v480_v62 }
  0x9a   : > { %796 = vpow2.f32 %v453_v8  ;;  %v488_v16 = vsub.f32 %v438_v58, %v448_v1  ;;  %v485_v19 = vmul.f32 1.442695, %v484_v15  ;;  %v494_v49 = vsub.f32 1.0, %v284_v47 }
  0x9b   : > { %798 = vpow2.f32 %v457_v23 }
  0x9c   : > { %800 = vpow2.f32 %v461_v9  ;;  %v489_v24 = vmul.f32 1.442695, %v488_v16 }
  0x9d   : > { %802 = vpow2.f32 %v465_v12 }
  0x9e   : > { %804 = vpow2.f32 %v469_v51 }
  0x9f   : > { %806 = vpow2.f32 %v473_v61 }
  0xa0   : > { %808 = vpow2.f32 %v477_v63 }
  0xa1   : > { %810 = vpow2.f32 %v481_v11 }
  0xa2   : > { %812 = vpow2.f32 %v485_v19 }
  0xa3   : > { %v795_v17 = vpop.eup %794  ;;  %814 = vpow2.f32 %v489_v24 }
  0xa4   : > { %v797_v18 = vpop.eup %796 }
  0xa5   : > { %v799_v20 = vpop.eup %798  ;;  %v455_v21 = vadd.f32 %v797_v18, %v795_v17 }
  0xa6   : > { %v801_v22 = vpop.eup %800 }
  0xa7   : > { %v459_v25 = vadd.f32 %v799_v20, %v455_v21  ;;  %v803_v26 = vpop.eup %802 }
  0xa8   : > { %v805_v28 = vpop.eup %804 }
  0xa9   : > { %v463_v27 = vadd.f32 %v801_v22, %v459_v25  ;;  %v807_v30 = vpop.eup %806 }
  0xaa   : > { %v809_v32 = vpop.eup %808 }
  0xab   : > { %v467_v29 = vadd.f32 %v803_v26, %v463_v27  ;;  %v811_v34 = vpop.eup %810 }
  0xac   : > { %v813_v36 = vpop.eup %812 }
  0xad   : > { %v471_v31 = vadd.f32 %v805_v28, %v467_v29  ;;  %v815_v38 = vpop.eup %814 }
  0xaf   : > { %v475_v33 = vadd.f32 %v807_v30, %v471_v31 }
  0xb1   : > { %v479_v35 = vadd.f32 %v809_v32, %v475_v33 }
  0xb3   : > { %v483_v37 = vadd.f32 %v811_v34, %v479_v35 }
  0xb5   : > { %v487_v39 = vadd.f32 %v813_v36, %v483_v37 }
  0xb7   : > { %v491_v40 = vadd.f32 %v815_v38, %v487_v39 }
  0xb9   : > { %816 = vrcp.f32 %v491_v40 }
  0xc3   : > { %v817_v41 = vpop.eup %816 }
  0xc4   : > { %v493_v42 = vmul.f32 %v817_v41, %v815_v38 }
  0xc6   : > { %v496_v43 = vsub.f32 0.0, %v493_v42  ;;  %v495_v54 = vmul.f32 %v494_v49, %v493_v42 }
  0xc8   : > { %v497_v0 = vmul.f32 1.442695, %v496_v43 }
  0xca   : > { %818 = vpow2.f32 %v497_v0 }
  0xd4   : > { %v819_v44 = vpop.eup %818 }
  0xd5   : > { %v499_v45 = vadd.f32 1.0, %v819_v44  ;;  %v502_v46 = vmul.f32 -0.5, %v819_v44  ;;  %v505_v50 = vand.u32 2147483647, %v819_v44 }
  0xd7   : > { %820 = vlog2.f32 %v499_v45  ;;  %v503_v48 = vadd.f32 1.0, %v502_v46  ;;  %vm506_vm0 = vcmp.lt.f32.partialorder %v505_v50, 0.0004427343 }
  0xd9   : > { %v504_v52 = vmul.f32 %v819_v44, %v503_v48 }
  0xe1   : > { %v821_v53 = vpop.eup %820 }
  0xe2   : > { %v501_v55 = vmul.f32 0.6931472, %v821_v53 }
  0xe4   : > { %v507_v56 = vsel %vm506_vm0, %v504_v52, %v501_v55 }
  0xe5   : > { %v508_v57 = vadd.f32 %v507_v56, %v495_v54 }
  0xe7   : > { %510 = vst [vmem:[%s274_s29] sm:$0xff] %v508_v57 }
  0xe8   : > { %895 = shalt.err (!%p892_p2)
}
  0xe9   : > { %s896_s8 = scalar_lea.hbm %s1370_s19, 128  ;;  %s900_s30 = scalar_lea.hbm %s1423_s4, 256 }
  0xea   : > { %p897_p10 = scmp.ne.s32.totalorder %s1370_s19, %s896_s8  ;;  %p901_p3 = scmp.lt.u32.totalorder %s1370_s19, %s1423_s4 }
  0xeb   : > { %p902_p4 = scmp.lt.u32.totalorder %s900_s30, %s896_s8  ;;  %p904_p8 = scmp.lt.u32.totalorder %s896_s8, %s1370_s19 }
  0xec   : > { %p898_p1 = pnand %p897_p10, %p1450_p11 }
  0xed   : > { %p903_p12 = por %p902_p4, %p901_p3 }
  0xee   : > { %p899_p13 = pneg %p898_p1 }
  0xef   : > { %p905_p5 = por %p904_p8, %p903_p12 }
  0xf1   : > { %p906_p6 = pnand %p905_p5, %p899_p13 }
  0xf3   : > { %909 = shalt.err (!%p906_p6)
}
  0xf4   : > { %719 = dma.vmem_to_hbm [thread:$0]  (%p1450_p11), %s1372_s2, 128, %s1370_s19, %s512_s21  }
  0xf5 PF: > { %s539_s12 = sand.u32 1, %s952_s15   ;;  %p1451_p7 = scmp.ne.s32.totalorder %s1438_s26, 0 }
  0xf6   : > { %p1452_p9 = scmp.ge.s32.totalorder %s972_s20, 2  ;;  %s540_s25 = scalar_lea.sflag [#allocation4], %s539_s12 }
  0xf8   : > { %p733_p0 = pnand %p1452_p9, %p1451_p7 }
  0xfa   : > { %947 = dma.done.wait (!%p733_p0), %s540_s25, 128  }
  0xfb   : > { %949 = vsyncadd (!%p733_p0), %s540_s25, 4294967168  ;;  %s22_s20 = sadd.s32 1, %s972_s20   ;;  %s1453_s18 = sld [smem:[#allocation14_spill]] }
  0xfc   : > { %p19_p2 = scmp.ge.s32.totalorder %s22_s20, 4   ;;  %s1454_s19 = sld [smem:[#allocation15_spill]] }
  0xfd   : > { %s1455_s15 = smov %s956_s16  ;;  %s1456_s16 = smov %s960_s17 }
  0xfe   : > { %s1457_s17 = smov %s1115_s7  ;;  %21 = sbr.rel (!%p19_p2) target bundleno = 12 (0xc), region = 95 }
 0x105   :  { %545 = vsyncpa [#allocation3], 1 }
 0x106   :  { %547 = vsyncpa [#allocation3 + $0x1], 1 }
 0x107   :  { %548 = vsyncpa [#allocation4], 1 }
 0x108   :  { %550 = vsyncpa [#allocation4 + $0x1], 1 }
 0x109   :  { %551 = vsyncpa [#allocation5], 1 }
 0x10a   :  { %553 = vsyncpa [#allocation5 + $0x1], 1 }
 0x10b   :  { %554 = vsyncpa [#allocation8], 1 }

</bundles_post_ra>
